<compile_context>
chip_gen: v7x
topology: tpu7x:2x2x1
jax: 0.10.0
libtpu: 0.0.40
codegen_flags: <defaults>
</compile_context>

<pallas_src>
import jax
import jax.numpy as jnp
from jax.experimental import pallas as pl
from jax.experimental.pallas import tpu as pltpu

LEAKY_SLOPE = 0.01
BN_EPS = 1e-5

# f32 keeps the 1e-4 check against the f32 reference tight.  On v6e/v7x flip to
# jnp.bfloat16 for ~2x MXU rate and half the HBM/VMEM traffic of x and the windows
# (accumulation stays f32 via preferred_element_type; BN stats / scale-shift /
# residual math below is always f32).  On v5e keep f32 (no bf16 VPU/EUP).
MATMUL_DTYPE = jnp.float32

# Explicit scoped-VMEM cap (the default is only 16/32 MiB, not physical VMEM); tiles
# are sized well below it so this value is safe on every generation
# (v5e/v6e: 128 MiB physical, v7x: 64 MiB).
VMEM_LIMIT_BYTES = 64 * 1024 * 1024


def _choose_tile_l(L, max_tile_l):
    """Largest L-tile TL with L % TL == 0 and (TL % 8 == 0 or TL == L)."""
    if L <= max_tile_l:
        return L
    for cand in range(min(max_tile_l, L), 7, -1):
        if L % cand == 0 and cand % 8 == 0:
            return cand
    # TODO(synk): ragged L (no 8-aligned divisor <= max_tile_l) needs masked stats /
    # output rows; fall back to a single fully-resident tile for now.
    return L


# ------------------------------ pass 1: BN partials ---------------------------
def _stats_kernel(xw_ref, w1_ref, stats_ref):
    # xw_ref   : (N, TL+4, Cin)  input window for this L-tile (2-row halo each side)
    # w1_ref   : (3, Cin, Cmid)  conv1 taps (VMEM-resident across the grid)
    # stats_ref: (2, Cmid)       row 0: sum(h), row 1: sum((h - tile_mean)^2)
    N, TLW, Cin = xw_ref.shape
    TL = TLW - 4

    # conv1 over the TL rows this tile owns: 3 accumulating MXU matmuls on static
    # sublane slices of the VMEM tile (no im2col concat).  conv1's bias is omitted:
    # it cancels exactly under training-mode batch statistics.
    h = jnp.zeros((N * TL, w1_ref.shape[2]), jnp.float32)
    for k in range(3):
        xk = xw_ref[:, 1 + k:1 + k + TL, :].reshape(N * TL, Cin)
        h = h + jnp.dot(xk, w1_ref[k], preferred_element_type=jnp.float32)

    # Per-tile centered partials (merged Chan-style in the wrapper) -- avoids the
    # catastrophic cancellation of a one-pass E[x^2] - E[x]^2 formulation.
    s = jnp.sum(h, axis=0, keepdims=True)
    mean = s * (1.0 / (N * TL))
    d = h - mean
    stats_ref[0:1, :] = s
    stats_ref[1:2, :] = jnp.sum(d * d, axis=0, keepdims=True)


# ------------------- pass 2: conv1 -> BN -> LeakyReLU -> conv2 + res ----------
def _make_main_kernel(has_shortcut_conv):
    """Builds the kernel; `has_shortcut_conv` is a trace-time (static) flag."""

    def kernel(xw_ref, w1_ref, scale_ref, shift_ref, w2_ref, bias_ref, *rest):
        # xw_ref  : (N, TL+4, Cin)   input window (2-row halo each side)
        # w1_ref  : (3, Cin, Cmid)   conv1 taps
        # scale_ref, shift_ref : (1, Cmid)  fused BatchNorm scale/shift
        # w2_ref  : (3, Cmid, Cout)  conv2 taps
        # bias_ref: (1, Cout)        conv2 bias (+ shortcut bias, pre-folded)
        # rest    : ([wsc_ref (Cin,Cout)], out_ref (N,TL,Cout), a_ref (N,TL+2,Cmid))
        if has_shortcut_conv:
            wsc_ref, out_ref, a_ref = rest
        else:
            out_ref, a_ref = rest

        N, TLW, Cin = xw_ref.shape
        TL = TLW - 4
        TLa = TL + 2
        Cmid = w1_ref.shape[2]
        Cout = w2_ref.shape[2]
        t = pl.program_id(0)
        L_total = pl.num_programs(0) * TL

        # ---- conv1 recomputed with a 1-row halo (cheaper than staging h to HBM) ---
        h = jnp.zeros((N * TLa, Cmid), jnp.float32)
        for k in range(3):  # static unroll: 3 accumulating matmuls, no concat/im2col
            xk = xw_ref[:, k:k + TLa, :].reshape(N * TLa, Cin)
            h = h + jnp.dot(xk, w1_ref[k], preferred_element_type=jnp.float32)

        # ---- BatchNorm (precomputed scale/shift) + LeakyReLU -----------------------
        a = h * scale_ref[...] + shift_ref[...]
        a = jnp.where(a >= 0, a, LEAKY_SLOPE * a)

        # conv2's zero padding: halo rows of `a` whose global row falls outside [0, L)
        # must be exactly zero (not LeakyReLU(BN(conv1(zero-padded x)))).
        j = jax.lax.broadcasted_iota(jnp.int32, (N, TLa, 1), 1)
        g = t * TL - 1 + j
        valid = jnp.logical_and(g >= 0, g < L_total)
        a_ref[...] = jnp.where(valid, a.reshape(N, TLa, Cmid), 0.0).astype(a_ref.dtype)

        # ---- conv2: 3 accumulating matmuls on static sublane slices of the scratch --
        y = jnp.zeros((N * TL, Cout), jnp.float32)
        for k in range(3):
            ak = a_ref[:, k:k + TL, :].reshape(N * TL, Cmid)
            y = y + jnp.dot(ak, w2_ref[k], preferred_element_type=jnp.float32)

        # ---- shortcut / residual add (+ folded bias) --------------------------------
        xc = xw_ref[:, 2:2 + TL, :].reshape(N * TL, Cin)
        if has_shortcut_conv:
            res = jnp.dot(xc, wsc_ref[...], preferred_element_type=jnp.float32)
        else:
            res = xc.astype(jnp.float32)            # Identity shortcut: Cin == Cout

        y = y + res + bias_ref[...]
        out_ref[...] = y.reshape(N, TL, Cout).astype(out_ref.dtype)

    return kernel


# ------------------------------------ wrapper ---------------------------------
def resblock_pallas(x_ncw, params, *, max_tile_l=512):
    """x_ncw: (N, Cin, L) float32, params in torch layouts. Returns (N, Cout, L)."""
    w1, b1, gamma, beta, w2, b2, wsc, bsc = params
    del b1  # cancels exactly under training-mode BatchNorm statistics
    N, Cin, L = x_ncw.shape
    Cmid = w1.shape[0]
    Cout = w2.shape[0]
    has_sc = wsc is not None

    TL = _choose_tile_l(L, max_tile_l)
    T = L // TL
    TLW = TL + 4

    # ---- layout / halo glue: one fused HBM pass over x ----------------------------
    # TODO(synk): when ResBlocks are chained, keep activations NLC between blocks so
    # the NCW<->NLC transposes drop out; an overlapping-halo pl.Element BlockSpec
    # would remove the (TL+4)/TL window duplication entirely.
    x_nlc = jnp.transpose(x_ncw, (0, 2, 1))                                  # (N, L, Cin)
    x_pad = jnp.pad(x_nlc, ((0, 0), (2, 2), (0, 0)))                         # (N, L+4, Cin)
    win_idx = jnp.arange(T)[:, None] * TL + jnp.arange(TLW)[None, :]         # (T, TL+4)
    x_win = jnp.transpose(x_pad[:, win_idx, :], (1, 0, 2, 3)).astype(MATMUL_DTYPE)

    # Parameter-sized glue; pre-cast once so the tiled grid never re-casts per step.
    w1_taps = jnp.transpose(w1, (2, 1, 0)).astype(MATMUL_DTYPE)              # (3, Cin, Cmid)
    w2_taps = jnp.transpose(w2, (2, 1, 0)).astype(MATMUL_DTYPE)              # (3, Cmid, Cout)
    bias_out = b2.astype(jnp.float32)
    if has_sc:
        bias_out = bias_out + bsc.astype(jnp.float32)   # fold shortcut bias into conv2 bias
    bias_out = bias_out.reshape(1, Cout)

    cparams = pltpu.CompilerParams(dimension_semantics=("parallel",),
                                   vmem_limit_bytes=VMEM_LIMIT_BYTES)
    win_spec = pl.BlockSpec((None, N, TLW, Cin), lambda t: (t, 0, 0, 0))
    w1_spec = pl.BlockSpec((3, Cin, Cmid), lambda t: (0, 0, 0))

    # ---- pass 1: conv1 + per-tile per-channel BatchNorm partials -------------------
    stats = pl.pallas_call(
        _stats_kernel,
        out_shape=jax.ShapeDtypeStruct((T, 2, Cmid), jnp.float32),
        grid=(T,),
        in_specs=[win_spec, w1_spec],
        out_specs=pl.BlockSpec((None, 2, Cmid), lambda t: (t, 0, 0)),
        compiler_params=cparams,
    )(x_win, w1_taps)

    # Merge per-tile partials (tiny (T, Cmid) math; exact, cancellation-free).
    M_tile = N * TL
    M_total = N * L
    mean_t = stats[:, 0, :] / M_tile                                         # (T, Cmid)
    gmean = jnp.mean(mean_t, axis=0, keepdims=True)                          # (1, Cmid)
    m2 = (jnp.sum(stats[:, 1, :], axis=0, keepdims=True)
          + M_tile * jnp.sum((mean_t - gmean) ** 2, axis=0, keepdims=True))
    var = m2 / M_total                                                       # biased
    scale = gamma.reshape(1, Cmid).astype(jnp.float32) * jax.lax.rsqrt(var + BN_EPS)
    shift = beta.reshape(1, Cmid).astype(jnp.float32) - gmean * scale

    # ---- pass 2: conv1 (recomputed) -> BN -> LeakyReLU -> conv2 + residual ---------
    args = [x_win, w1_taps, scale, shift, w2_taps, bias_out]
    in_specs = [
        win_spec,
        w1_spec,
        pl.BlockSpec((1, Cmid), lambda t: (0, 0)),
        pl.BlockSpec((1, Cmid), lambda t: (0, 0)),
        pl.BlockSpec((3, Cmid, Cout), lambda t: (0, 0, 0)),
        pl.BlockSpec((1, Cout), lambda t: (0, 0)),
    ]
    if has_sc:
        args.append(jnp.transpose(wsc[:, :, 0], (1, 0)).astype(MATMUL_DTYPE))  # (Cin, Cout)
        in_specs.append(pl.BlockSpec((Cin, Cout), lambda t: (0, 0)))

    # TODO(synk): for lane-dense stores pad/choose Cout to a multiple of 128, and add a
    # second 'parallel' grid axis over N when N is large enough to blow the VMEM budget.
    out_nlc = pl.pallas_call(
        _make_main_kernel(has_sc),
        out_shape=jax.ShapeDtypeStruct((N, L, Cout), jnp.float32),
        grid=(T,),
        in_specs=in_specs,
        out_specs=pl.BlockSpec((N, TL, Cout), lambda t: (0, t, 0)),
        scratch_shapes=[pltpu.VMEM((N, TL + 2, Cmid), MATMUL_DTYPE)],
        compiler_params=cparams,
    )(*args)

    return jnp.transpose(out_nlc, (0, 2, 1))                                 # back to NCW


# ------------------------------ pure-JAX reference ----------------------------
def resblock_ref(x_ncw, params):
    w1, b1, gamma, beta, w2, b2, wsc, bsc = params
    dn = ('NCH', 'OIH', 'NCH')

    def conv1d(x, w, b, pad):
        y = jax.lax.conv_general_dilated(x, w, window_strides=(1,),
                                         padding=[(pad, pad)],
                                         dimension_numbers=dn)
        return y + b[None, :, None]

    h = conv1d(x_ncw, w1, b1, 1)
    mean = jnp.mean(h, axis=(0, 2), keepdims=True)
    var = jnp.mean((h - mean) ** 2, axis=(0, 2), keepdims=True)
    h = (h - mean) / jnp.sqrt(var + BN_EPS)
    h = h * gamma[None, :, None] + beta[None, :, None]
    h = jnp.where(h >= 0, h, LEAKY_SLOPE * h)
    out = conv1d(h, w2, b2, 1)
    if wsc is None:
        sc = x_ncw
    else:
        sc = conv1d(x_ncw, wsc, bsc, 0)
    return out + sc


# ------------------------------------ main ------------------------------------
def _make_params(key, in_c, out_c):
    Cmid = out_c * 2
    ks = jax.random.split(key, 6)
    w1 = 0.1 * jax.random.normal(ks[0], (Cmid, in_c, 3), jnp.float32)
    b1 = 0.1 * jax.random.normal(ks[1], (Cmid,), jnp.float32)
    gamma = jnp.ones((Cmid,), jnp.float32)    # BatchNorm1d init
    beta = jnp.zeros((Cmid,), jnp.float32)
    w2 = 0.1 * jax.random.normal(ks[2], (out_c, Cmid, 3), jnp.float32)
    b2 = 0.1 * jax.random.normal(ks[3], (out_c,), jnp.float32)
    if in_c != out_c:
        wsc = 0.1 * jax.random.normal(ks[4], (out_c, in_c, 1), jnp.float32)
        bsc = 0.1 * jax.random.normal(ks[5], (out_c,), jnp.float32)
    else:
        wsc, bsc = None, None                 # nn.Identity shortcut
    return (w1, b1, gamma, beta, w2, b2, wsc, bsc)


if __name__ == "__main__":
    key = jax.random.PRNGKey(0)
    k_x1, k_p1, k_x2, k_p2 = jax.random.split(key, 4)
    N, L = 2, 16

    # Case 1: in_c != out_c  -> real 1x1 shortcut conv (single L-tile)
    in_c, out_c = 4, 8
    x1 = jax.random.normal(k_x1, (N, in_c, L), jnp.float32)
    p1 = _make_params(k_p1, in_c, out_c)
    y1 = jax.block_until_ready(resblock_pallas(x1, p1))
    y1_ref = resblock_ref(x1, p1)
    assert y1.shape == (N, out_c, L), y1.shape
    assert jnp.allclose(y1, y1_ref, atol=1e-4, rtol=1e-4), \
        float(jnp.max(jnp.abs(y1 - y1_ref)))

    # Case 1b: same, but force the multi-tile path (TL=8 -> 2 L-tiles):
    # exercises cross-tile halos and the cross-tile BN-partials merge.
    y1b = jax.block_until_ready(resblock_pallas(x1, p1, max_tile_l=8))
    assert jnp.allclose(y1b, y1_ref, atol=1e-4, rtol=1e-4), \
        float(jnp.max(jnp.abs(y1b - y1_ref)))

    # Case 2: in_c == out_c  -> Identity shortcut (shortcut matmul skipped in kernel)
    in_c2 = out_c2 = 8
    x2 = jax.random.normal(k_x2, (N, in_c2, L), jnp.float32)
    p2 = _make_params(k_p2, in_c2, out_c2)
    y2 = jax.block_until_ready(resblock_pallas(x2, p2))
    y2_ref = resblock_ref(x2, p2)
    assert y2.shape == (N, out_c2, L), y2.shape
    assert jnp.allclose(y2, y2_ref, atol=1e-4, rtol=1e-4), \
        float(jnp.max(jnp.abs(y2 - y2_ref)))

    # Case 2b: Identity shortcut, forced multi-tile path.
    y2b = jax.block_until_ready(resblock_pallas(x2, p2, max_tile_l=8))
    assert jnp.allclose(y2b, y2_ref, atol=1e-4, rtol=1e-4), \
        float(jnp.max(jnp.abs(y2b - y2_ref)))

    print("KERNEL_OK")
</pallas_src>

<mosaic_0001>
module attributes {stable_mosaic.version = 11 : i64} {
  func.func @_stats_kernel(%arg0: i32, %arg1: memref<1x2x20x4xf32, #tpu.memory_space<vmem>>, %arg2: memref<3x4x16xf32, #tpu.memory_space<vmem>>, %arg3: memref<1x2x16xf32, #tpu.memory_space<vmem>>) attributes {dimension_semantics = [#tpu.dimension_semantics<parallel>], iteration_bounds = array<i64: 1>, scalar_prefetch = 0 : i64, scratch_operands = 0 : i64, tpu.core_type = #tpu.core_type<tc>, window_params = [{transform_indices = @transform_0, window_bounds = array<i64: 1, 2, 20, 4>}, {pipeline_mode = #tpu.pipeline_mode<synchronous>, transform_indices = @transform_1, window_bounds = array<i64: 3, 4, 16>}, {transform_indices = @transform_2, window_bounds = array<i64: 1, 2, 16>}]} {
    %cst = arith.constant 0.000000e+00 : f32
    %0 = vector.broadcast %cst : f32 to vector<32x16xf32>
    %c0 = arith.constant 0 : index
    %c0_0 = arith.constant 0 : index
    %c1 = arith.constant 1 : index
    %c0_1 = arith.constant 0 : index
    %1 = vector.load %arg1[%c0, %c0_0, %c1, %c0_1] : memref<1x2x20x4xf32, #tpu.memory_space<vmem>>, vector<1x2x16x4xf32>
    %2 = vector.shape_cast %1 : vector<1x2x16x4xf32> to vector<2x16x4xf32>
    %3 = vector.shape_cast %2 : vector<2x16x4xf32> to vector<32x4xf32>
    %c0_2 = arith.constant 0 : index
    %c0_3 = arith.constant 0 : index
    %c0_4 = arith.constant 0 : index
    %4 = vector.load %arg2[%c0_2, %c0_3, %c0_4] : memref<3x4x16xf32, #tpu.memory_space<vmem>>, vector<1x4x16xf32>
    %5 = vector.shape_cast %4 : vector<1x4x16xf32> to vector<4x16xf32>
    %cst_5 = arith.constant dense<0.000000e+00> : vector<32x16xf32>
    %6 = tpu.matmul %3, %5, %cst_5 {dimension_numbers = #tpu.dot_dimension_numbers<[1], [0], [0], [1], [0, 0, 1, 1], [], []>} : vector<32x4xf32>, vector<4x16xf32>, vector<32x16xf32> -> vector<32x16xf32>
    %7 = arith.addf %0, %6 : vector<32x16xf32>
    %c0_6 = arith.constant 0 : index
    %c0_7 = arith.constant 0 : index
    %c2 = arith.constant 2 : index
    %c0_8 = arith.constant 0 : index
    %8 = vector.load %arg1[%c0_6, %c0_7, %c2, %c0_8] : memref<1x2x20x4xf32, #tpu.memory_space<vmem>>, vector<1x2x16x4xf32>
    %9 = vector.shape_cast %8 : vector<1x2x16x4xf32> to vector<2x16x4xf32>
    %10 = vector.shape_cast %9 : vector<2x16x4xf32> to vector<32x4xf32>
    %c1_9 = arith.constant 1 : index
    %c0_10 = arith.constant 0 : index
    %c0_11 = arith.constant 0 : index
    %11 = vector.load %arg2[%c1_9, %c0_10, %c0_11] : memref<3x4x16xf32, #tpu.memory_space<vmem>>, vector<1x4x16xf32>
    %12 = vector.shape_cast %11 : vector<1x4x16xf32> to vector<4x16xf32>
    %cst_12 = arith.constant dense<0.000000e+00> : vector<32x16xf32>
    %13 = tpu.matmul %10, %12, %cst_12 {dimension_numbers = #tpu.dot_dimension_numbers<[1], [0], [0], [1], [0, 0, 1, 1], [], []>} : vector<32x4xf32>, vector<4x16xf32>, vector<32x16xf32> -> vector<32x16xf32>
    %14 = arith.addf %7, %13 : vector<32x16xf32>
    %c0_13 = arith.constant 0 : index
    %c0_14 = arith.constant 0 : index
    %c3 = arith.constant 3 : index
    %c0_15 = arith.constant 0 : index
    %15 = vector.load %arg1[%c0_13, %c0_14, %c3, %c0_15] : memref<1x2x20x4xf32, #tpu.memory_space<vmem>>, vector<1x2x16x4xf32>
    %16 = vector.shape_cast %15 : vector<1x2x16x4xf32> to vector<2x16x4xf32>
    %17 = vector.shape_cast %16 : vector<2x16x4xf32> to vector<32x4xf32>
    %c2_16 = arith.constant 2 : index
    %c0_17 = arith.constant 0 : index
    %c0_18 = arith.constant 0 : index
    %18 = vector.load %arg2[%c2_16, %c0_17, %c0_18] : memref<3x4x16xf32, #tpu.memory_space<vmem>>, vector<1x4x16xf32>
    %19 = vector.shape_cast %18 : vector<1x4x16xf32> to vector<4x16xf32>
    %cst_19 = arith.constant dense<0.000000e+00> : vector<32x16xf32>
    %20 = tpu.matmul %17, %19, %cst_19 {dimension_numbers = #tpu.dot_dimension_numbers<[1], [0], [0], [1], [0, 0, 1, 1], [], []>} : vector<32x4xf32>, vector<4x16xf32>, vector<32x16xf32> -> vector<32x16xf32>
    %21 = arith.addf %14, %20 : vector<32x16xf32>
    %cst_20 = arith.constant dense<0.000000e+00> : vector<16xf32>
    %22 = vector.multi_reduction <add>, %21, %cst_20 [0] : vector<32x16xf32> to vector<16xf32>
    %23 = vector.shape_cast %22 : vector<16xf32> to vector<1x16xf32>
    %cst_21 = arith.constant 3.125000e-02 : f32
    %24 = vector.broadcast %cst_21 : f32 to vector<1x16xf32>
    %25 = arith.mulf %23, %24 : vector<1x16xf32>
    %26 = vector.broadcast %25 : vector<1x16xf32> to vector<32x16xf32>
    %27 = arith.subf %21, %26 : vector<32x16xf32>
    %c0_22 = arith.constant 0 : index
    %c0_23 = arith.constant 0 : index
    %c0_24 = arith.constant 0 : index
    %28 = vector.load %arg3[%c0_22, %c0_23, %c0_24] : memref<1x2x16xf32, #tpu.memory_space<vmem>>, vector<1x1x16xf32>
    %29 = vector.shape_cast %28 : vector<1x1x16xf32> to vector<1x16xf32>
    %30 = vector.shape_cast %23 : vector<1x16xf32> to vector<1x1x16xf32>
    tpu.vector_store %arg3[%c0_22, %c0_23, %c0_24], %30 {strides = array<i32>} : memref<1x2x16xf32, #tpu.memory_space<vmem>>, vector<1x1x16xf32>,
    %31 = arith.mulf %27, %27 : vector<32x16xf32>
    %cst_25 = arith.constant dense<0.000000e+00> : vector<16xf32>
    %32 = vector.multi_reduction <add>, %31, %cst_25 [0] : vector<32x16xf32> to vector<16xf32>
    %33 = vector.shape_cast %32 : vector<16xf32> to vector<1x16xf32>
    %c0_26 = arith.constant 0 : index
    %c1_27 = arith.constant 1 : index
    %c0_28 = arith.constant 0 : index
    %34 = vector.load %arg3[%c0_26, %c1_27, %c0_28] : memref<1x2x16xf32, #tpu.memory_space<vmem>>, vector<1x1x16xf32>
    %35 = vector.shape_cast %34 : vector<1x1x16xf32> to vector<1x16xf32>
    %36 = vector.shape_cast %33 : vector<1x16xf32> to vector<1x1x16xf32>
    tpu.vector_store %arg3[%c0_26, %c1_27, %c0_28], %36 {strides = array<i32>} : memref<1x2x16xf32, #tpu.memory_space<vmem>>, vector<1x1x16xf32>,
    return
  }
  func.func @transform_0(%arg0: i32) -> (i32, i32, i32, i32) {
    %c0_i32 = arith.constant 0 : i32
    %c0_i32_0 = arith.constant 0 : i32
    %c0_i32_1 = arith.constant 0 : i32
    %c0_i32_2 = arith.constant 0 : i32
    return %arg0, %c0_i32, %c0_i32_0, %c0_i32_1 : i32, i32, i32, i32
  }
  func.func @transform_1(%arg0: i32) -> (i32, i32, i32) {
    %c0_i32 = arith.constant 0 : i32
    %c0_i32_0 = arith.constant 0 : i32
    %c0_i32_1 = arith.constant 0 : i32
    %c0_i32_2 = arith.constant 0 : i32
    return %c0_i32, %c0_i32_0, %c0_i32_1 : i32, i32, i32
  }
  func.func @transform_2(%arg0: i32) -> (i32, i32, i32) {
    %c0_i32 = arith.constant 0 : i32
    %c0_i32_0 = arith.constant 0 : i32
    %c0_i32_1 = arith.constant 0 : i32
    return %arg0, %c0_i32, %c0_i32_0 : i32, i32, i32
  }
}

</mosaic_0001>

<bundles_post_ra>
// kernel: tpu_custom_call.1
= control target key start
LH: loop header
LB: loop body
LE: loop exit
PB: predicated region body
PF: predicated region fallthrough
CT: control target
= control target key end

     0   :  { %7 = vsyncpa [#allocation3], 0  ;;  %s649_s0 = inlined_call_operand.hbm [shape: f32[1,2,20,4], index: 0, kind: input, shape index: {}]   ;;  %s650_s1 = inlined_call_operand.hbm [shape: f32[3,4,16], index: 1, kind: input, shape index: {}]   ;;  %s651_s2 = inlined_call_operand.hbm [shape: f32[1,2,16], index: 2, kind: output, shape index: {}]  }
   0x1   :  { %8 = vsyncpa [#allocation6], 0 }
   0x2   :  { %9 = vsyncpa [#allocation4], 0  ;;  %s561_s9 = smov [#allocation2]   ;;  %s489_s13 = scalar_lea.hbm %s649_s0, 768 }
   0x3   :  { %s15_s10 = sshll.u32 %s561_s9, 4  ;;  %p490_p0 = scmp.ne.s32.totalorder %s649_s0, %s489_s13  ;;  %s16_s10 = int_to_ptr.vmem [resolvable:$true] %s15_s10 }
   0x4   :  { %p493_p1 = scmp.lt.u32.totalorder %s489_s13, %s649_s0 }
   0x6   :  { %p495_p2 = pnand %p493_p1, %p490_p0 }
   0x8   :  { %498 = shalt.err (!%p495_p2)
}
   0x9   :  { %s499_s18 = scalar_lea.vmem %s16_s10, 768  ;;  %p504_p4 = scmp.lt.s32.totalorder %s16_s10, %s16_s10 }
   0xa   :  { %p500_p3 = scmp.ne.s32.totalorder %s16_s10, %s499_s18  ;;  %p505_p5 = scmp.lt.s32.totalorder %s499_s18, %s499_s18 }
   0xc   :  { %p506_p6 = por %p505_p5, %p504_p4 }
   0xe   :  { %p507_p7 = pnand %p506_p6, %p500_p3 }
  0x10   :  { %510 = shalt.err (!%p507_p7)
}
  0x11   :  { %s562_s19 = smov 128   ;;  %s563_s20 = smov 8  }
  0x12   :  { %21 = dma.hbm_to_vmem [thread:$0]  %s649_s0, 768, %s16_s10, [#allocation3], %s562_s19, %s562_s19, %s563_s20  }
  0x13   :  { %s564_s23 = smov [#allocation5]   ;;  %s511_s27 = scalar_lea.hbm %s650_s1, 192 }
  0x14   :  { %s27_s24 = sshll.u32 %s564_s23, 4  ;;  %p512_p8 = scmp.ne.s32.totalorder %s650_s1, %s511_s27  ;;  %s28_s24 = int_to_ptr.vmem [resolvable:$true] %s27_s24 }
  0x15   :  { %p515_p9 = scmp.lt.u32.totalorder %s511_s27, %s650_s1 }
  0x17   :  { %p517_p10 = pnand %p515_p9, %p512_p8 }
  0x19   :  { %520 = shalt.err (!%p517_p10)
}
  0x1a   :  { %s521_s4 = scalar_lea.vmem %s28_s24, 192  ;;  %p526_p12 = scmp.lt.s32.totalorder %s28_s24, %s28_s24 }
  0x1b   :  { %p522_p11 = scmp.ne.s32.totalorder %s28_s24, %s521_s4  ;;  %p527_p13 = scmp.lt.s32.totalorder %s521_s4, %s521_s4 }
  0x1d   :  { %p528_p0 = por %p527_p13, %p526_p12 }
  0x1f   :  { %p529_p1 = pnand %p528_p0, %p522_p11 }
  0x21   :  { %532 = shalt.err (!%p529_p1)
}
  0x22   :  { %s565_s0 = smov 64   ;;  %s566_s5 = smov 4  }
  0x23   :  { %33 = dma.hbm_to_vmem [thread:$0]  %s650_s1, 192, %s28_s24, [#allocation6], %s565_s0, %s565_s0, %s566_s5  }
  0x24   :  { %555 = dma.done.wait [#allocation3], 768  }
  0x25   :  { %556 = vsyncadd [#allocation3], 4294966528 }
  0x26   :  { %557 = dma.done.wait [#allocation6], 192  }
  0x27   :  { %558 = vsyncadd [#allocation6], 4294967104  ;;  %vm64_vm0 = vcmask 1043456   ;;  %vm51_vm1 = vcmask 31744   ;;  %v50_v0 = vld [vmem:[#allocation5 + $0x4] sm:$0xf] }
  0x28   :  { %v44_v1 = vld [vmem:[#allocation5] sm:$0xf]  ;;  %v45_v2 = vld [vmem:[#allocation2 + $0x2] sm:$0xff]  ;;  %448 = vmatprep.subr.msk.mxu1 %vm64_vm0, %v50_v0  ;;  %v258_v6 = vld [vmem:[#allocation5 + $0x8] sm:$0xf]  ;;  %vm363_vm2 = vcmask 130048  }
  0x29   :  { %456 = vmatprep.subr.msk.mxu0 %vm64_vm0, %v44_v1  ;;  %v40_v3 = vld [vmem:[#allocation2 + $0x1] sm:$0xff]  ;;  %v46_v4 = vld [vmem:[#allocation2 + $0xa] sm:$0xff]  ;;  %449 = vmatpush3.msk.msra.mxu1 %vm64_vm0, %v50_v0  ;;  %v42_v10 = vld [vmem:[#allocation2 + $0x19] sm:$0xff]  ;;  %vm382_vm3 = vcmask 122880   ;;  %s567_s1 = smov [#allocation7]  }
  0x2a   :  { %450 = vmatprep.mubr.msk.f32.mxu1 %vm51_vm1, %v45_v2  ;;  %v41_v5 = vld [vmem:[#allocation2 + $0x9] sm:$0xff]  ;;  %457 = vmatpush3.msk.msra.mxu0 %vm64_vm0, %v44_v1  ;;  %v47_v7 = vld [vmem:[#allocation2 + $0x1a] sm:$0xff]  ;;  %s408_s8 = sshll.u32 %s567_s1, 4  ;;  %s409_s8 = int_to_ptr.vmem [resolvable:$true] %s408_s8 }
  0x2b   :  { %458 = vmatprep.mubr.msk.f32.mxu0 %vm51_vm1, %v40_v3  ;;  %451 = vmatmul.mubr.msk.f32.vlgmr.msra.gmra.mrb[0].mxu1 %vm51_vm1, %v46_v4  ;;  %v253_v8 = vld [vmem:[#allocation2 + $0x3] sm:$0xff]  ;;  %v254_v11 = vld [vmem:[#allocation2 + $0xb] sm:$0xff]  ;;  %v255_v12 = vld [vmem:[#allocation2 + $0x1b] sm:$0xff]  ;;  %s533_s9 = scalar_lea.vmem %s409_s8, 32  ;;  %p538_p3 = scmp.lt.s32.totalorder %s409_s8, %s409_s8 }
  0x2c   :  { %472 = vmatprep.subr.msk.mxu1 %vm64_vm0, %v44_v1  ;;  %459 = vmatmul.mubr.msk.f32.vlgmr.msra.gmra.mrb[0].mxu0 %vm51_vm1, %v41_v5  ;;  %v48_v9 = vld [vmem:[#allocation2 + $0x22] sm:$0xff]  ;;  %p534_p2 = scmp.ne.s32.totalorder %s409_s8, %s533_s9  ;;  %p539_p4 = scmp.lt.s32.totalorder %s533_s9, %s533_s9 }
  0x2d   :  { %464 = vmatprep.subr.msk.mxu0 %vm64_vm0, %v258_v6  ;;  %473 = vmatpush3.msk.msra.mxu1 %vm64_vm0, %v44_v1  ;;  %v43_v13 = vld [vmem:[#allocation2 + $0x21] sm:$0xff] }
  0x2e   :  { %465 = vmatpush3.msk.msra.mxu0 %vm64_vm0, %v258_v6  ;;  %453 = vmatprep.mubr.msk.f32.mxu1 %vm51_vm1, %v47_v7  ;;  %v256_v14 = vld [vmem:[#allocation2 + $0x23] sm:$0xff]  ;;  %p540_p5 = por %p539_p4, %p538_p3 }
  0x2f   :  { %466 = vmatprep.mubr.msk.f32.mxu0 %vm51_vm1, %v253_v8  ;;  %454 = vmatmul.mubr.msk.f32.gmra.mrb[2].mxu1 %vm51_vm1, %v48_v9 }
  0x30   :  { %461 = vmatprep.mubr.msk.f32.mxu1 %vm51_vm1, %v42_v10  ;;  %p541_p6 = pnand %p540_p5, %p534_p2 }
  0x34   :  { %467 = vmatmul.mubr.msk.f32.vlgmr.msra.gmra.mrb[0].mxu0 %vm51_vm1, %v254_v11 }
  0x35   :  { %469 = vmatprep.mubr.msk.f32.mxu0 %vm51_vm1, %v255_v12 }
  0x37   :  { %462 = vmatmul.mubr.msk.f32.vlgmr.msra.gmra.mrb[2].mxu1 %vm51_vm1, %v43_v13 }
  0x38   :  { %470 = vmatmul.mubr.msk.f32.gmra.mrb[2].mxu0 %vm51_vm1, %v256_v14 }
  0xfe   :  { %v452_v15 = vpop.f32.mrb[0].mxu1 }
  0xff   :  { %v134_v16 = vpop.f32.mrb[1].mxu1 }
 0x107   :  { %v468_v17 = vpop.f32.mrb[0].mxu0 }
 0x108   :  { %v474_v18 = vadd.f32 %v468_v17, %v452_v15  ;;  %v340_v19 = vpop.f32.mrb[1].mxu0 }
 0x109   :  { %v475_v20 = vadd.f32 %v340_v19, %v134_v16 }
 0x10a   :  { %v365_v21 = vsel %vm363_vm2, %v474_v18, 0.0  ;;  %v463_v22 = vpop.f32.mrb[2].mxu1 }
 0x10b   :  { %v364_v23 = vsel %vm363_vm2, %v475_v20, 0.0  ;;  %v471_v24 = vpop.f32.mrb[2].mxu0  ;;  %v244_v25 = vpop.f32.mrb[3].mxu1 }
 0x10c   :  { %v366_v26 = vadd.f32 %v365_v21, %v364_v23  ;;  %v476_v27 = vadd.f32 %v471_v24, %v463_v22  ;;  %v350_v28 = vpop.f32.mrb[3].mxu0 }
 0x10d   :  { %v477_v29 = vadd.f32 %v350_v28, %v244_v25 }
 0x10e   :  { %v369_v32 = vsel %vm363_vm2, %v476_v27, 0.0 }
 0x10f   :  { %v367_v30 = vsel %vm363_vm2, %v477_v29, 0.0 }
 0x110   :  { %v368_v31 = vadd.f32 %v367_v30, %v366_v26 }
 0x112   :  { %v370_v33 = vadd.f32 %v369_v32, %v368_v31 }
 0x114   :  { %v371_v34 = vrot.slane %v370_v33, 4 }
 0x116   :  { %v372_v35 = vadd.f32 %v371_v34, %v370_v33 }
 0x118   :  { %v373_v36 = vrot.slane %v372_v35, 2 }
 0x11a   :  { %v374_v37 = vadd.f32 %v373_v36, %v372_v35 }
 0x11c   :  { %v375_v38 = vrot.slane %v374_v37, 1 }
 0x11e   :  { %v376_v39 = vadd.f32 %v375_v38, %v374_v37 }
 0x120   :  { %v377_v40 = vmul.f32 0.03125, %v376_v39  ;;  %383 = vst.msk [vmem:[#allocation7] sm:$0x1] %vm382_vm3, %v376_v39 }
 0x122   :  { %v378_v41 = vsub.f32 %v475_v20, %v377_v40  ;;  %v379_v42 = vsub.f32 %v474_v18, %v377_v40  ;;  %v380_v43 = vsub.f32 %v477_v29, %v377_v40  ;;  %v381_v44 = vsub.f32 %v476_v27, %v377_v40 }
 0x124   :  { %v384_v45 = vmul.f32 %v378_v41, %v378_v41  ;;  %v385_v46 = vmul.f32 %v379_v42, %v379_v42  ;;  %v386_v47 = vmul.f32 %v380_v43, %v380_v43  ;;  %v387_v48 = vmul.f32 %v381_v44, %v381_v44 }
 0x126   :  { %v388_v49 = vsel %vm363_vm2, %v384_v45, 0.0  ;;  %v389_v50 = vsel %vm363_vm2, %v385_v46, 0.0  ;;  %v391_v52 = vsel %vm363_vm2, %v386_v47, 0.0  ;;  %v393_v54 = vsel %vm363_vm2, %v387_v48, 0.0 }
 0x127   :  { %v390_v51 = vadd.f32 %v389_v50, %v388_v49 }
 0x129   :  { %v392_v53 = vadd.f32 %v391_v52, %v390_v51 }
 0x12b   :  { %v394_v55 = vadd.f32 %v393_v54, %v392_v53 }
 0x12d   :  { %v395_v56 = vrot.slane %v394_v55, 4 }
 0x12f   :  { %v396_v57 = vadd.f32 %v395_v56, %v394_v55 }
 0x131   :  { %v397_v58 = vrot.slane %v396_v57, 2 }
 0x133   :  { %v398_v59 = vadd.f32 %v397_v58, %v396_v57 }
 0x135   :  { %v399_v60 = vrot.slane %v398_v59, 1 }
 0x137   :  { %v400_v61 = vadd.f32 %v399_v60, %v398_v59 }
 0x139   :  { %401 = vst.msk [vmem:[#allocation7 + $0x1] sm:$0x1] %vm382_vm3, %v400_v61 }
 0x13a   :  { %544 = shalt.err (!%p541_p6)
}
 0x13b   :  { %s545_s12 = scalar_lea.hbm %s651_s2, 32 }
 0x13c   :  { %p546_p7 = scmp.ne.s32.totalorder %s651_s2, %s545_s12  ;;  %p549_p8 = scmp.lt.u32.totalorder %s545_s12, %s651_s2 }
 0x13e   :  { %p551_p9 = pnand %p549_p8, %p546_p7 }
 0x140   :  { %554 = shalt.err (!%p551_p9)
}
 0x141   :  { %411 = dma.vmem_to_hbm [thread:$0]  %s409_s8, 32, %s651_s2, [#allocation4]  }
 0x142   :  { %559 = dma.done.wait [#allocation4], 32  }
 0x143   :  { %560 = vsyncadd [#allocation4], 4294967264 }
 0x144   :  { %415 = vsyncpa [#allocation3], 1 }
 0x145   :  { %416 = vsyncpa [#allocation6], 1 }
 0x146   :  { %417 = vsyncpa [#allocation4], 1 }

</bundles_post_ra>
